<compile_context>
chip_gen: v5e
topology: v5e:2x2
jax: 0.10.0
libtpu: 0.0.40
codegen_flags: <defaults>
</compile_context>

<pallas_src>
import functools

import jax
import jax.numpy as jnp
from jax.experimental import pallas as pl
from jax.experimental.pallas import tpu as pltpu

LANE = 128      # lane width: last dim of every block is a multiple of this
SUBLANE = 8     # f32 sublane packing


def _round_up(x, m):
    return ((x + m - 1) // m) * m


# The PyTorch module takes `act` as a constructor arg; support the common ones.
_ACT_FNS = {
    "relu": lambda h: jnp.maximum(h, 0.0),
    "tanh": jnp.tanh,
    "gelu": jax.nn.gelu,
    "sigmoid": jax.nn.sigmoid,
    "identity": lambda h: h,
}


def _fused_mlp_kernel(*refs, n_mid, final_act, act):
    """All layers on one (tm, D_in) batch tile; activation stays in vregs/VMEM.

    refs (n_mid > 0): x(tm,D_in), w0(D_in,D_h), b0(1,D_h),
                      wm(n_mid,D_h,D_h), bm(n_mid,1,D_h),
                      wl(D_h,D_out), bl(1,D_out), o(tm,D_out)
    refs (n_mid == 0): same without wm/bm.
    """
    if n_mid:
        x_ref, w0_ref, b0_ref, wm_ref, bm_ref, wl_ref, bl_ref, o_ref = refs
    else:
        x_ref, w0_ref, b0_ref, wl_ref, bl_ref, o_ref = refs
        wm_ref = bm_ref = None
    act_fn = _ACT_FNS[act]

    # First layer: (tm, D_in) @ (D_in, D_h) on the MXU, f32 accumulation.
    h = jnp.dot(x_ref[...], w0_ref[...], preferred_element_type=jnp.float32)
    h = act_fn(h + b0_ref[...].astype(jnp.float32))

    # Hidden-to-hidden layers (static unroll; n_mid is small).
    for l in range(n_mid):
        w = wm_ref[l]                                   # (D_h, D_h)
        h = jnp.dot(h.astype(w.dtype), w, preferred_element_type=jnp.float32)
        h = act_fn(h + bm_ref[l].astype(jnp.float32))   # (1, D_h) broadcasts

    # Final layer: no `act`; torch.relu only when final_act=True.
    wl = wl_ref[...]
    h = jnp.dot(h.astype(wl.dtype), wl, preferred_element_type=jnp.float32)
    h = h + bl_ref[...].astype(jnp.float32)
    if final_act:
        h = jnp.maximum(h, 0.0)
    o_ref[...] = h.astype(o_ref.dtype)


def init_mlp_params(key, input_size, hidden_size, num_classes, depth):
    """Mirrors nn.Linear's default U(-1/sqrt(in), 1/sqrt(in)); weights stored
    pre-transposed as (in, out) so the kernel computes x @ W + b."""
    sizes = [input_size] + [hidden_size] * (depth - 1) + [num_classes]
    params = []
    for i in range(len(sizes) - 1):
        in_d, out_d = sizes[i], sizes[i + 1]
        key, kw, kb = jax.random.split(key, 3)
        bound = 1.0 / (in_d ** 0.5)
        w = jax.random.uniform(kw, (in_d, out_d), jnp.float32, -bound, bound)
        b = jax.random.uniform(kb, (out_d,), jnp.float32, -bound, bound)
        params.append((w, b))
    return params


@functools.partial(
    jax.jit, static_argnames=("final_act", "act", "compute_dtype", "block_m"))
def mlp_forward(params, x, *, final_act=False, act="relu",
                compute_dtype=jnp.float32, block_m=128):
    """Matches MLP.forward: `act` after every layer except the last; the last
    layer goes through torch.relu only when final_act=True."""
    depth = len(params)
    assert depth >= 2, "module always has >= 2 Linear layers"
    (w0, b0), mids, (wl, bl) = params[0], params[1:-1], params[-1]
    input_size, hidden = w0.shape
    num_classes = wl.shape[1]

    cd = compute_dtype
    D_in = _round_up(input_size, LANE)
    D_h = _round_up(hidden, LANE)
    D_out = _round_up(num_classes, LANE)

    # --- zero-pad params to lane-dense shapes (exact: act(0)=0 for ReLU) ----
    w0p = jnp.zeros((D_in, D_h), cd).at[:input_size, :hidden].set(w0.astype(cd))
    b0p = jnp.zeros((1, D_h), cd).at[0, :hidden].set(b0.astype(cd))
    wlp = jnp.zeros((D_h, D_out), cd).at[:hidden, :num_classes].set(wl.astype(cd))
    blp = jnp.zeros((1, D_out), cd).at[0, :num_classes].set(bl.astype(cd))

    n_mid = len(mids)
    if n_mid:
        wmp = jnp.zeros((n_mid, D_h, D_h), cd)
        bmp = jnp.zeros((n_mid, 1, D_h), cd)
        for l, (w, b) in enumerate(mids):
            wmp = wmp.at[l, :hidden, :hidden].set(w.astype(cd))
            bmp = bmp.at[l, 0, :hidden].set(b.astype(cd))

    # --- pad batch to a whole number of tiles -------------------------------
    M = x.shape[0]
    tm = min(block_m, _round_up(M, SUBLANE))
    M_pad = _round_up(M, tm)
    x_pad = jnp.zeros((M_pad, D_in), cd).at[:M, :input_size].set(x.astype(cd))

    # Fused kernel keeps all layer weights resident in VMEM (double-buffered
    # activations + weights + f32 intermediate). Conservative static budget.
    itemsize = jnp.dtype(cd).itemsize
    weight_elems = D_in * D_h + n_mid * D_h * D_h + D_h * D_out
    bias_elems = D_h * (1 + n_mid) + D_out
    vmem_est = (2 * (tm * D_in + tm * D_out + weight_elems + bias_elems) * itemsize
                + tm * max(D_h, D_out) * 4)
    assert vmem_est < 24 * 1024 * 1024, (
        "fused MLP kernel needs all layer weights resident in VMEM; "
        "hidden size too large for this path")
    # TODO(synk): add a K/N-tiled accumulator path for hidden sizes exceeding VMEM.

    in_arrays = [x_pad, w0p, b0p] + ([wmp, bmp] if n_mid else []) + [wlp, blp]
    in_specs = [
        pl.BlockSpec((tm, D_in), lambda i: (i, 0)),
        pl.BlockSpec((D_in, D_h), lambda i: (0, 0)),
        pl.BlockSpec((1, D_h), lambda i: (0, 0)),
    ]
    if n_mid:
        in_specs += [
            pl.BlockSpec((n_mid, D_h, D_h), lambda i: (0, 0, 0)),
            pl.BlockSpec((n_mid, 1, D_h), lambda i: (0, 0, 0)),
        ]
    in_specs += [
        pl.BlockSpec((D_h, D_out), lambda i: (0, 0)),
        pl.BlockSpec((1, D_out), lambda i: (0, 0)),
    ]

    out = pl.pallas_call(
        functools.partial(_fused_mlp_kernel, n_mid=n_mid,
                          final_act=bool(final_act), act=act),
        out_shape=jax.ShapeDtypeStruct((M_pad, D_out), jnp.float32),
        grid=(M_pad // tm,),
        in_specs=in_specs,
        out_specs=pl.BlockSpec((tm, D_out), lambda i: (i, 0)),
        compiler_params=pltpu.CompilerParams(dimension_semantics=("parallel",)),
    )(*in_arrays)

    return out[:M, :num_classes]


def mlp_reference(params, x, final_act=False, act="relu"):
    """Pure-JAX reference (same math as the PyTorch module)."""
    act_fn = _ACT_FNS[act]
    for w, b in params[:-1]:
        x = act_fn(x @ w + b)
    w, b = params[-1]
    x = x @ w + b
    return jnp.maximum(x, 0.0) if final_act else x


if __name__ == "__main__":
    batch, input_size, hidden_size, num_classes, depth = 8, 32, 32, 8, 3

    key = jax.random.PRNGKey(0)
    key, kx = jax.random.split(key)
    x = jax.random.normal(kx, (batch, input_size), jnp.float32)
    params = init_mlp_params(key, input_size, hidden_size, num_classes, depth)

    out = jax.block_until_ready(mlp_forward(params, x, final_act=False))
    out_relu = jax.block_until_ready(mlp_forward(params, x, final_act=True))

    assert out.shape == (batch, num_classes)
    assert out_relu.shape == (batch, num_classes)

    ref = mlp_reference(params, x, final_act=False)
    ref_relu = mlp_reference(params, x, final_act=True)
    assert jnp.allclose(out, ref, rtol=1e-4, atol=1e-4)
    assert jnp.allclose(out_relu, ref_relu, rtol=1e-4, atol=1e-4)

    # Exercise the no-hidden-to-hidden path (depth == 2) as well.
    params2 = init_mlp_params(key, input_size, hidden_size, num_classes, 2)
    out2 = jax.block_until_ready(mlp_forward(params2, x, final_act=False))
    assert jnp.allclose(out2, mlp_reference(params2, x), rtol=1e-4, atol=1e-4)

    print("KERNEL_OK")
</pallas_src>

<mosaic_0001>
module attributes {stable_mosaic.version = 11 : i64} {
  func.func @_fused_mlp_kernel(%arg0: i32, %arg1: memref<8x128xf32, #tpu.memory_space<vmem>>, %arg2: memref<128x128xf32, #tpu.memory_space<vmem>>, %arg3: memref<1x128xf32, #tpu.memory_space<vmem>>, %arg4: memref<1x128x128xf32, #tpu.memory_space<vmem>>, %arg5: memref<1x1x128xf32, #tpu.memory_space<vmem>>, %arg6: memref<128x128xf32, #tpu.memory_space<vmem>>, %arg7: memref<1x128xf32, #tpu.memory_space<vmem>>, %arg8: memref<8x128xf32, #tpu.memory_space<vmem>>) attributes {dimension_semantics = [#tpu.dimension_semantics<parallel>], iteration_bounds = array<i64: 1>, scalar_prefetch = 0 : i64, scratch_operands = 0 : i64, tpu.core_type = #tpu.core_type<tc>, window_params = [{transform_indices = @transform_0, window_bounds = array<i64: 8, 128>}, {pipeline_mode = #tpu.pipeline_mode<synchronous>, transform_indices = @transform_1, window_bounds = array<i64: 128, 128>}, {pipeline_mode = #tpu.pipeline_mode<synchronous>, transform_indices = @transform_2, window_bounds = array<i64: 1, 128>}, {pipeline_mode = #tpu.pipeline_mode<synchronous>, transform_indices = @transform_3, window_bounds = array<i64: 1, 128, 128>}, {pipeline_mode = #tpu.pipeline_mode<synchronous>, transform_indices = @transform_4, window_bounds = array<i64: 1, 1, 128>}, {pipeline_mode = #tpu.pipeline_mode<synchronous>, transform_indices = @transform_5, window_bounds = array<i64: 128, 128>}, {pipeline_mode = #tpu.pipeline_mode<synchronous>, transform_indices = @transform_6, window_bounds = array<i64: 1, 128>}, {transform_indices = @transform_7, window_bounds = array<i64: 8, 128>}]} {
    %c0 = arith.constant 0 : index
    %c0_0 = arith.constant 0 : index
    %0 = vector.load %arg1[%c0, %c0_0] : memref<8x128xf32, #tpu.memory_space<vmem>>, vector<8x128xf32>
    %c0_1 = arith.constant 0 : index
    %c0_2 = arith.constant 0 : index
    %1 = vector.load %arg2[%c0_1, %c0_2] : memref<128x128xf32, #tpu.memory_space<vmem>>, vector<128x128xf32>
    %cst = arith.constant dense<0.000000e+00> : vector<8x128xf32>
    %2 = tpu.matmul %0, %1, %cst {dimension_numbers = #tpu.dot_dimension_numbers<[1], [0], [0], [1], [0, 0, 1, 1], [], []>} : vector<8x128xf32>, vector<128x128xf32>, vector<8x128xf32> -> vector<8x128xf32>
    %c0_3 = arith.constant 0 : index
    %c0_4 = arith.constant 0 : index
    %3 = vector.load %arg3[%c0_3, %c0_4] : memref<1x128xf32, #tpu.memory_space<vmem>>, vector<1x128xf32>
    %4 = vector.broadcast %3 : vector<1x128xf32> to vector<8x128xf32>
    %5 = arith.addf %2, %4 : vector<8x128xf32>
    %cst_5 = arith.constant 0.000000e+00 : f32
    %6 = vector.broadcast %cst_5 : f32 to vector<8x128xf32>
    %7 = arith.maximumf %5, %6 : vector<8x128xf32>
    %c0_6 = arith.constant 0 : index
    %c0_7 = arith.constant 0 : index
    %c0_8 = arith.constant 0 : index
    %8 = vector.load %arg4[%c0_6, %c0_7, %c0_8] : memref<1x128x128xf32, #tpu.memory_space<vmem>>, vector<1x128x128xf32>
    %9 = vector.shape_cast %8 : vector<1x128x128xf32> to vector<128x128xf32>
    %cst_9 = arith.constant dense<0.000000e+00> : vector<8x128xf32>
    %10 = tpu.matmul %7, %9, %cst_9 {dimension_numbers = #tpu.dot_dimension_numbers<[1], [0], [0], [1], [0, 0, 1, 1], [], []>} : vector<8x128xf32>, vector<128x128xf32>, vector<8x128xf32> -> vector<8x128xf32>
    %c0_10 = arith.constant 0 : index
    %c0_11 = arith.constant 0 : index
    %c0_12 = arith.constant 0 : index
    %11 = vector.load %arg5[%c0_10, %c0_11, %c0_12] : memref<1x1x128xf32, #tpu.memory_space<vmem>>, vector<1x1x128xf32>
    %12 = vector.shape_cast %11 : vector<1x1x128xf32> to vector<1x128xf32>
    %13 = vector.broadcast %12 : vector<1x128xf32> to vector<8x128xf32>
    %14 = arith.addf %10, %13 : vector<8x128xf32>
    %cst_13 = arith.constant 0.000000e+00 : f32
    %15 = vector.broadcast %cst_13 : f32 to vector<8x128xf32>
    %16 = arith.maximumf %14, %15 : vector<8x128xf32>
    %c0_14 = arith.constant 0 : index
    %c0_15 = arith.constant 0 : index
    %17 = vector.load %arg6[%c0_14, %c0_15] : memref<128x128xf32, #tpu.memory_space<vmem>>, vector<128x128xf32>
    %cst_16 = arith.constant dense<0.000000e+00> : vector<8x128xf32>
    %18 = tpu.matmul %16, %17, %cst_16 {dimension_numbers = #tpu.dot_dimension_numbers<[1], [0], [0], [1], [0, 0, 1, 1], [], []>} : vector<8x128xf32>, vector<128x128xf32>, vector<8x128xf32> -> vector<8x128xf32>
    %c0_17 = arith.constant 0 : index
    %c0_18 = arith.constant 0 : index
    %19 = vector.load %arg7[%c0_17, %c0_18] : memref<1x128xf32, #tpu.memory_space<vmem>>, vector<1x128xf32>
    %20 = vector.broadcast %19 : vector<1x128xf32> to vector<8x128xf32>
    %21 = arith.addf %18, %20 : vector<8x128xf32>
    %c0_19 = arith.constant 0 : index
    %c0_20 = arith.constant 0 : index
    %22 = vector.load %arg8[%c0_19, %c0_20] : memref<8x128xf32, #tpu.memory_space<vmem>>, vector<8x128xf32>
    tpu.vector_store %arg8[%c0_19, %c0_20], %21 {strides = array<i32>} : memref<8x128xf32, #tpu.memory_space<vmem>>, vector<8x128xf32>,
    return
  }
  func.func @transform_0(%arg0: i32) -> (i32, i32) {
    %c0_i32 = arith.constant 0 : i32
    %c0_i32_0 = arith.constant 0 : i32
    return %arg0, %c0_i32 : i32, i32
  }
  func.func @transform_1(%arg0: i32) -> (i32, i32) {
    %c0_i32 = arith.constant 0 : i32
    %c0_i32_0 = arith.constant 0 : i32
    %c0_i32_1 = arith.constant 0 : i32
    return %c0_i32, %c0_i32_0 : i32, i32
  }
  func.func @transform_2(%arg0: i32) -> (i32, i32) {
    %c0_i32 = arith.constant 0 : i32
    %c0_i32_0 = arith.constant 0 : i32
    %c0_i32_1 = arith.constant 0 : i32
    return %c0_i32, %c0_i32_0 : i32, i32
  }
  func.func @transform_3(%arg0: i32) -> (i32, i32, i32) {
    %c0_i32 = arith.constant 0 : i32
    %c0_i32_0 = arith.constant 0 : i32
    %c0_i32_1 = arith.constant 0 : i32
    %c0_i32_2 = arith.constant 0 : i32
    return %c0_i32, %c0_i32_0, %c0_i32_1 : i32, i32, i32
  }
  func.func @transform_4(%arg0: i32) -> (i32, i32, i32) {
    %c0_i32 = arith.constant 0 : i32
    %c0_i32_0 = arith.constant 0 : i32
    %c0_i32_1 = arith.constant 0 : i32
    %c0_i32_2 = arith.constant 0 : i32
    return %c0_i32, %c0_i32_0, %c0_i32_1 : i32, i32, i32
  }
  func.func @transform_5(%arg0: i32) -> (i32, i32) {
    %c0_i32 = arith.constant 0 : i32
    %c0_i32_0 = arith.constant 0 : i32
    %c0_i32_1 = arith.constant 0 : i32
    return %c0_i32, %c0_i32_0 : i32, i32
  }
  func.func @transform_6(%arg0: i32) -> (i32, i32) {
    %c0_i32 = arith.constant 0 : i32
    %c0_i32_0 = arith.constant 0 : i32
    %c0_i32_1 = arith.constant 0 : i32
    return %c0_i32, %c0_i32_0 : i32, i32
  }
  func.func @transform_7(%arg0: i32) -> (i32, i32) {
    %c0_i32 = arith.constant 0 : i32
    %c0_i32_0 = arith.constant 0 : i32
    return %arg0, %c0_i32 : i32, i32
  }
}

</mosaic_0001>

<bundles_post_ra>
// kernel: mlp_forward.1
= control target key start
LH: loop header
LB: loop body
LE: loop exit
PB: predicated region body
PF: predicated region fallthrough
CT: control target
= control target key end

     0   :  { %s397_s0 = inlined_call_operand.vmem [shape: f32[8,128], index: 0, kind: input, shape index: {}]   ;;  %s398_s1 = inlined_call_operand.vmem [shape: f32[128,128], index: 1, kind: input, shape index: {}]   ;;  %s399_s2 = inlined_call_operand.vmem [shape: f32[1,128], index: 2, kind: input, shape index: {}]   ;;  %s400_s3 = inlined_call_operand.vmem [shape: f32[1,128,128], index: 3, kind: input, shape index: {}]   ;;  %s401_s4 = inlined_call_operand.vmem [shape: f32[1,1,128], index: 4, kind: input, shape index: {}]   ;;  %s402_s5 = inlined_call_operand.vmem [shape: f32[128,128], index: 5, kind: input, shape index: {}]   ;;  %s403_s6 = inlined_call_operand.vmem [shape: f32[1,128], index: 6, kind: input, shape index: {}]   ;;  %s404_s7 = inlined_call_operand.hbm [shape: f32[8,128], index: 7, kind: output, shape index: {}]  }
   0x1   :  { %v43_v0 = vld [vmem:[%s398_s1 + $0x78] sm:$0xff]  ;;  %v42_v1 = vld [vmem:[%s398_s1 + $0x70] sm:$0xff]  ;;  %v41_v2 = vld [vmem:[%s398_s1 + $0x68] sm:$0xff] }
   0x2   :  { %48 = vmatpush.msra.mxu0 %v43_v0  ;;  %v40_v3 = vld [vmem:[%s398_s1 + $0x60] sm:$0xff]  ;;  %v84_v4 = vld [vmem:[%s400_s3 + $0x78] sm:$0xff]  ;;  %v83_v6 = vld [vmem:[%s400_s3 + $0x70] sm:$0xff] }
   0x3   :  { %v39_v5 = vld [vmem:[%s398_s1 + $0x58] sm:$0xff]  ;;  %89 = vmatpush.msra.mxu1 %v84_v4  ;;  %v82_v7 = vld [vmem:[%s400_s3 + $0x68] sm:$0xff]  ;;  %v38_v8 = vld [vmem:[%s398_s1 + $0x50] sm:$0xff] }
   0x4   :  { %49 = vmatpush.msra.mxu0 %v42_v1  ;;  %v81_v9 = vld [vmem:[%s400_s3 + $0x60] sm:$0xff]  ;;  %v37_v10 = vld [vmem:[%s398_s1 + $0x48] sm:$0xff]  ;;  %v80_v11 = vld [vmem:[%s400_s3 + $0x58] sm:$0xff] }
   0x5   :  { %90 = vmatpush.msra.mxu1 %v83_v6 }
   0x6   :  { %50 = vmatpush.msra.mxu0 %v41_v2 }
   0x7   :  { %91 = vmatpush.msra.mxu1 %v82_v7 }
   0x8   :  { %51 = vmatpush.msra.mxu0 %v40_v3 }
   0xa   :  { %52 = vmatpush.msra.mxu0 %v39_v5 }
   0xc   :  { %53 = vmatpush.msra.mxu0 %v38_v8 }
   0xd   :  { %12 = vsyncpa [#allocation3], 0  ;;  %v36_v12 = vld [vmem:[%s398_s1 + $0x40] sm:$0xff]  ;;  %92 = vmatpush.msra.mxu1 %v81_v9  ;;  %v79_v13 = vld [vmem:[%s400_s3 + $0x50] sm:$0xff]  ;;  %s197_s29 = smov [#allocation2]   ;;  %s158_s10 = sshll.u32 %s404_s7, 4  ;;  %s159_s10 = int_to_ptr.hbm [resolvable:$true] %s158_s10 }
   0xe   :  { %54 = vmatpush.msra.mxu0 %v37_v10  ;;  %v35_v14 = vld [vmem:[%s398_s1 + $0x38] sm:$0xff]  ;;  %v78_v15 = vld [vmem:[%s400_s3 + $0x48] sm:$0xff]  ;;  %v34_v16 = vld [vmem:[%s398_s1 + $0x30] sm:$0xff]  ;;  %s156_s30 = sshll.u32 %s197_s29, 4  ;;  %s157_s30 = int_to_ptr.vmem [resolvable:$true] %s156_s30 }
   0xf   :  { %93 = vmatpush.msra.mxu1 %v80_v11  ;;  %v77_v17 = vld [vmem:[%s400_s3 + $0x40] sm:$0xff]  ;;  %v33_v18 = vld [vmem:[%s398_s1 + $0x28] sm:$0xff]  ;;  %v76_v19 = vld [vmem:[%s400_s3 + $0x38] sm:$0xff] }
  0x10   :  { %55 = vmatpush.msra.mxu0 %v36_v12  ;;  %v32_v20 = vld [vmem:[%s398_s1 + $0x20] sm:$0xff]  ;;  %v75_v21 = vld [vmem:[%s400_s3 + $0x30] sm:$0xff]  ;;  %v31_v22 = vld [vmem:[%s398_s1 + $0x18] sm:$0xff] }
  0x11   :  { %94 = vmatpush.msra.mxu1 %v79_v13  ;;  %v74_v23 = vld [vmem:[%s400_s3 + $0x28] sm:$0xff]  ;;  %v30_v24 = vld [vmem:[%s398_s1 + $0x10] sm:$0xff]  ;;  %v73_v25 = vld [vmem:[%s400_s3 + $0x20] sm:$0xff] }
  0x12   :  { %56 = vmatpush.msra.mxu0 %v35_v14  ;;  %v29_v26 = vld [vmem:[%s398_s1 + $0x8] sm:$0xff]  ;;  %v72_v27 = vld [vmem:[%s400_s3 + $0x18] sm:$0xff]  ;;  %v28_v28 = vld [vmem:[%s398_s1] sm:$0xff] }
  0x13   :  { %95 = vmatpush.msra.mxu1 %v78_v15  ;;  %v27_v29 = vld [vmem:[%s397_s0] sm:$0xff]  ;;  %v71_v30 = vld [vmem:[%s400_s3 + $0x10] sm:$0xff]  ;;  %v70_v31 = vld [vmem:[%s400_s3 + $0x8] sm:$0xff] }
  0x14   :  { %57 = vmatpush.msra.mxu0 %v34_v16  ;;  %v69_v32 = vld [vmem:[%s400_s3] sm:$0xff]  ;;  %v125_v33 = vld [vmem:[%s402_s5 + $0x78] sm:$0xff]  ;;  %v124_v34 = vld [vmem:[%s402_s5 + $0x70] sm:$0xff] }
  0x15   :  { %96 = vmatpush.msra.mxu1 %v77_v17  ;;  %130 = vmatpush.msra.mxu2 %v125_v33  ;;  %v123_v35 = vld [vmem:[%s402_s5 + $0x68] sm:$0xff]  ;;  %v122_v36 = vld [vmem:[%s402_s5 + $0x60] sm:$0xff]  ;;  %v121_v37 = vld [vmem:[%s402_s5 + $0x58] sm:$0xff] }
  0x16   :  { %58 = vmatpush.msra.mxu0 %v33_v18  ;;  %v120_v38 = vld [vmem:[%s402_s5 + $0x50] sm:$0xff]  ;;  %v119_v39 = vld [vmem:[%s402_s5 + $0x48] sm:$0xff]  ;;  %v118_v40 = vld [vmem:[%s402_s5 + $0x40] sm:$0xff] }
  0x17   :  { %97 = vmatpush.msra.mxu1 %v76_v19  ;;  %131 = vmatpush.msra.mxu2 %v124_v34  ;;  %v117_v41 = vld [vmem:[%s402_s5 + $0x38] sm:$0xff]  ;;  %v116_v42 = vld [vmem:[%s402_s5 + $0x30] sm:$0xff]  ;;  %v115_v43 = vld [vmem:[%s402_s5 + $0x28] sm:$0xff] }
  0x18   :  { %59 = vmatpush.msra.mxu0 %v32_v20  ;;  %v114_v44 = vld [vmem:[%s402_s5 + $0x20] sm:$0xff]  ;;  %v113_v45 = vld [vmem:[%s402_s5 + $0x18] sm:$0xff]  ;;  %v112_v50 = vld [vmem:[%s402_s5 + $0x10] sm:$0xff] }
  0x19   :  { %98 = vmatpush.msra.mxu1 %v75_v21  ;;  %132 = vmatpush.msra.mxu2 %v123_v35  ;;  %v168_v46 = vld [vmem:[%s399_s2] ss:$0 sm:$0xff]  ;;  %v111_v51 = vld [vmem:[%s402_s5 + $0x8] sm:$0xff] }
  0x1a   :  { %60 = vmatpush.msra.mxu0 %v31_v22  ;;  %v110_v52 = vld [vmem:[%s402_s5] sm:$0xff] }
  0x1b   :  { %99 = vmatpush.msra.mxu1 %v74_v23  ;;  %133 = vmatpush.msra.mxu2 %v122_v36  ;;  %v169_v53 = vld [vmem:[%s401_s4] ss:$0 sm:$0xff] }
  0x1c   :  { %61 = vmatpush.msra.mxu0 %v30_v24  ;;  %v170_v57 = vld [vmem:[%s403_s6] ss:$0 sm:$0xff] }
  0x1d   :  { %100 = vmatpush.msra.mxu1 %v73_v25  ;;  %134 = vmatpush.msra.mxu2 %v121_v37 }
  0x1e   :  { %62 = vmatpush.msra.mxu0 %v29_v26 }
  0x1f   :  { %101 = vmatpush.msra.mxu1 %v72_v27  ;;  %135 = vmatpush.msra.mxu2 %v120_v38 }
  0x20   :  { %63 = vmatpush.msra.mxu0 %v28_v28 }
  0x21   :  { %64 = vmatmul.f32.vlgmr.msra.gmra.mxu0 %v27_v29  ;;  %102 = vmatpush.msra.mxu1 %v71_v30 }
  0x22   :  { %136 = vmatpush.msra.mxu2 %v119_v39 }
  0x23   :  { %103 = vmatpush.msra.mxu1 %v70_v31 }
  0x24   :  { %137 = vmatpush.msra.mxu2 %v118_v40 }
  0x25   :  { %104 = vmatpush.msra.mxu1 %v69_v32 }
  0x26   :  { %138 = vmatpush.msra.mxu2 %v117_v41 }
  0x28   :  { %139 = vmatpush.msra.mxu2 %v116_v42 }
  0x2a   :  { %140 = vmatpush.msra.mxu2 %v115_v43 }
  0x2c   :  { %141 = vmatpush.msra.mxu2 %v114_v44 }
  0x2e   :  { %142 = vmatpush.msra.mxu2 %v113_v45 }
  0x30   :  { %143 = vmatpush.msra.mxu2 %v112_v50 }
  0x32   :  { %144 = vmatpush.msra.mxu2 %v111_v51 }
  0x34   :  { %145 = vmatpush.msra.mxu2 %v110_v52 }
  0x9e   :  { %v65_v47 = vpop.f32.mrf.mxu0 }
  0x9f   :  { %v66_v48 = vadd.f32 %v168_v46, %v65_v47 }
  0xa1   :  { %v68_v49 = vmax.f32 %v66_v48, 0.0 }
  0xa3   :  { %105 = vmatmul.f32.vlgmr.msra.gmra.mxu1 %v68_v49 }
 0x120   :  { %v106_v54 = vpop.f32.mrf.mxu1 }
 0x121   :  { %v107_v55 = vadd.f32 %v169_v53, %v106_v54 }
 0x123   :  { %v109_v56 = vmax.f32 %v107_v55, 0.0 }
 0x125   :  { %146 = vmatmul.f32.vlgmr.msra.gmra.mxu2 %v109_v56 }
 0x1a8   :  { %v147_v58 = vpop.f32.mrf.mxu2 }
 0x1a9   :  { %v148_v59 = vadd.f32 %v170_v57, %v147_v58 }
 0x1ab   :  { %150 = vst [vmem:[#allocation2] sm:$0xff] %v148_v59 }
 0x1ac   :  { %161 = dma.vmem_to_hbm [thread:$0]  %s157_s30, 128, %s159_s10, [#allocation3]  }
 0x1ad   :  { %195 = dma.done.wait [#allocation3], 128  }
 0x1ae   :  { %196 = vsyncadd [#allocation3], 4294967168 }
 0x1af   :  { %166 = vsyncpa [#allocation3], 1 }

</bundles_post_ra>
